<compile_context>
chip_gen: v7x
topology: tpu7x:2x2x1
jax: 0.10.0
libtpu: 0.0.40
codegen_flags: <defaults>
</compile_context>

<pallas_src>
import functools

import jax
import jax.numpy as jnp
from jax import lax
from jax.experimental import pallas as pl
from jax.experimental.pallas import tpu as pltpu

EPS = 1e-5


def residual_block_kernel(x_ref, w1_ref, g1_ref, be1_ref,
                          w2_ref, g2_ref, be2_ref,
                          p_ref, pt_ref, out_ref, *, n, h, w, c):
    R = n * h            # sublane axis: batch * height rows
    WC = w * c           # lane axis: width * channels (128 here, lane-dense)
    inv_count = 1.0 / float(n * h * w)

    x2d = x_ref[...]     # (R, WC) f32 — conv1 input AND residual

    # Halo masks, hoisted & pre-broadcast once (JAX does not CSE
    # broadcast_in_dim; inline (R,1) masks would be re-materialized per conv).
    y_idx = lax.broadcasted_iota(jnp.int32, (R, 1), 0) % h
    mask_up = jnp.broadcast_to((y_idx >= 1).astype(jnp.float32), (R, WC))
    mask_dn = jnp.broadcast_to((y_idx < h - 1).astype(jnp.float32), (R, WC))

    def conv3x3(src, wband_ref):
        # src: (R, WC) f32.  One fused MXU matmul with K = 3*WC: the masked
        # up/center/down row taps sit side-by-side along lanes and multiply a
        # (3*WC, WC) block-banded bf16 weight (kw taps + width zero-padding
        # baked in).  Roll/mask stay f32 (VPU); only matmul operands are bf16;
        # accumulation is f32.
        up = pltpu.roll(src, shift=1, axis=0) * mask_up        # input row y-1
        dn = pltpu.roll(src, shift=R - 1, axis=0) * mask_dn    # input row y+1
        wide = jnp.concatenate([up.astype(jnp.bfloat16),
                                src.astype(jnp.bfloat16),
                                dn.astype(jnp.bfloat16)], axis=1)   # (R, 3*WC)
        return jnp.dot(wide, wband_ref[...],
                       preferred_element_type=jnp.float32)          # (R, WC) f32

    def batchnorm(y, g_ref, be_ref):
        # Single pass: per-lane sum / sum-of-squares folded to per-channel
        # stats via the (WC, C) selector P, broadcast back via P^T.  Fold and
        # broadcast dots are batched (2 rows each) -> 2 tiny MXU trips per BN.
        # Stats math stays f32 (E[x^2]-mean^2 is cancellation-prone).
        lane_stats = jnp.concatenate(
            [jnp.sum(y, axis=0, keepdims=True),
             jnp.sum(y * y, axis=0, keepdims=True)], axis=0)           # (2, WC)
        ch = jnp.dot(lane_stats, p_ref[...],
                     preferred_element_type=jnp.float32) * inv_count   # (2, C)
        mean = ch[0:1]                                                  # (1, C)
        var = jnp.maximum(ch[1:2] - mean * mean, 0.0)                   # biased var
        scale = g_ref[...] * lax.rsqrt(var + EPS)                       # (1, C)
        shift = be_ref[...] - mean * scale                              # (1, C)
        ss = jnp.concatenate([scale, shift], axis=0)                    # (2, C)
        ss_wc = jnp.dot(ss, pt_ref[...],
                        preferred_element_type=jnp.float32)             # (2, WC)
        return y * ss_wc[0:1] + ss_wc[1:2]

    # conv1 -> BN1 -> ReLU  (conv bias omitted: cancels exactly in batch-stat BN)
    h1 = jnp.maximum(batchnorm(conv3x3(x2d, w1_ref), g1_ref, be1_ref), 0.0)
    # conv2 -> BN2
    h2 = batchnorm(conv3x3(h1, w2_ref), g2_ref, be2_ref)
    # residual add + ReLU: one lane-dense (R, WC) unmasked store
    out_ref[...] = jnp.maximum(h2 + x2d, 0.0)


def make_band_weight(wt, W):
    """(3,3,Cin,Cout) HWIO -> (3*W*Cin, W*Cout) bf16 block-banded matrix.

    Row block kh, entry [w_in*Cin+ci, w_out*Cout+co] = wt[kh, w_in-w_out+1, ci, co]
    (zero outside the band), realizing the kw taps + width zero-padding so each
    conv is a single K = 3*W*Cin MXU matmul.
    """
    wt = wt.astype(jnp.float32)
    bands = [sum(jnp.kron(jnp.eye(W, k=1 - dw, dtype=jnp.float32), wt[kh, dw])
                 for dw in range(3))
             for kh in range(3)]
    return jnp.concatenate(bands, axis=0).astype(jnp.bfloat16)


def prepare_params(w1, g1, be1, w2, g2, be2, *, W):
    """Build kernel-side parameters once (hoisted out of the per-call path)."""
    C = w1.shape[3]
    p = jnp.tile(jnp.eye(C, dtype=jnp.float32), (W, 1))      # (W*C, C) selector
    return (make_band_weight(w1, W),
            g1.astype(jnp.float32).reshape(1, C),
            be1.astype(jnp.float32).reshape(1, C),
            make_band_weight(w2, W),
            g2.astype(jnp.float32).reshape(1, C),
            be2.astype(jnp.float32).reshape(1, C),
            p, p.T)


def residual_block_apply(x, params):
    N, H, W, C = x.shape
    R, WC = N * H, W * C
    assert WC % 128 == 0, "lane axis W*C must be a multiple of 128 (lane-dense)"
    assert R % 8 == 0, "sublane axis N*H must be a multiple of 8"

    x2d = x.astype(jnp.float32).reshape(R, WC)                # lane-dense view
    kernel = functools.partial(residual_block_kernel, n=N, h=H, w=W, c=C)
    n_in = 1 + len(params)

    out2d = pl.pallas_call(
        kernel,
        out_shape=jax.ShapeDtypeStruct((R, WC), jnp.float32),
        in_specs=[pl.BlockSpec(memory_space=pltpu.MemorySpace.VMEM)] * n_in,
        out_specs=pl.BlockSpec(memory_space=pltpu.MemorySpace.VMEM),
        compiler_params=pltpu.CompilerParams(vmem_limit_bytes=32 * 1024 * 1024),
    )(x2d, *params)
    return out2d.reshape(N, H, W, C)


def residual_block(x, w1, b1, g1, be1, w2, b2, g2, be2):
    """stride=1 / downsample=None ResidualBlock forward (training-mode BN).

    b1/b2 are accepted for parameter parity with nn.Conv2d(bias=True) but are
    not sent to the kernel: a per-channel constant added before batch-stat
    BatchNorm cancels exactly in (y - mean) and leaves the variance unchanged.
    """
    del b1, b2
    N, H, W, C = x.shape
    assert w1.shape[2] == w1.shape[3] == C and w2.shape[2] == w2.shape[3] == C, \
        "stride=1 / downsample=None ResidualBlock requires in_channels == out_channels"
    params = prepare_params(w1, g1, be1, w2, g2, be2, W=W)
    return residual_block_apply(x, params)


def reference(x, w1, b1, g1, be1, w2, b2, g2, be2):
    """Pure-JAX f32 reference matching the PyTorch module (training-mode BN)."""
    def conv(y, w, b):
        out = jax.lax.conv_general_dilated(
            y, w, window_strides=(1, 1), padding="SAME",
            dimension_numbers=("NHWC", "HWIO", "NHWC"),
            precision=jax.lax.Precision.HIGHEST)
        return out + b.reshape(1, 1, 1, -1)

    def bn(y, g, be):
        m = y.mean(axis=(0, 1, 2), keepdims=True)
        v = ((y - m) ** 2).mean(axis=(0, 1, 2), keepdims=True)
        return (y - m) * jax.lax.rsqrt(v + EPS) * g.reshape(1, 1, 1, -1) \
            + be.reshape(1, 1, 1, -1)

    h = jax.nn.relu(bn(conv(x, w1, b1), g1, be1))
    h = bn(conv(h, w2, b2), g2, be2)
    return jax.nn.relu(h + x)


if __name__ == "__main__":
    N, H, W = 2, 16, 16
    Cin = Cout = 8          # downsample=None, stride=1 => in == out; W*C = 128

    key = jax.random.PRNGKey(0)
    k = jax.random.split(key, 5)
    x = jax.random.normal(k[0], (N, H, W, Cin), jnp.float32)

    # deterministic synthetic parameters (Conv2d weight+bias, BN gamma=1, beta=0)
    w1 = jax.random.normal(k[1], (3, 3, Cin, Cout), jnp.float32) * 0.1
    b1 = jax.random.normal(k[2], (Cout,), jnp.float32) * 0.1
    w2 = jax.random.normal(k[3], (3, 3, Cout, Cout), jnp.float32) * 0.1
    b2 = jax.random.normal(k[4], (Cout,), jnp.float32) * 0.1
    g1 = jnp.ones((Cout,), jnp.float32)
    be1 = jnp.zeros((Cout,), jnp.float32)
    g2 = jnp.ones((Cout,), jnp.float32)
    be2 = jnp.zeros((Cout,), jnp.float32)

    # Weight prep hoisted: build once, apply (reusable across calls).
    params = prepare_params(w1, g1, be1, w2, g2, be2, W=W)
    out = residual_block_apply(x, params)
    out = jax.block_until_ready(out)

    ref = reference(x, w1, b1, g1, be1, w2, b2, g2, be2)
    assert out.shape == (N, H, W, Cout)
    # Tolerance reflects bf16 conv operands vs. f32 reference (two chained
    # convs + BN normalization -> ~1e-2 level absolute error is expected).
    assert jnp.allclose(out, ref, atol=5e-2, rtol=5e-2), \
        f"max abs err = {jnp.max(jnp.abs(out - ref))}"

    print("KERNEL_OK")
</pallas_src>

<mosaic_0001>
module attributes {stable_mosaic.version = 11 : i64} {
  func.func @residual_block_kernel(%arg0: memref<32x128xf32, #tpu.memory_space<vmem>>, %arg1: memref<384x128xbf16, #tpu.memory_space<vmem>>, %arg2: memref<1x8xf32, #tpu.memory_space<vmem>>, %arg3: memref<1x8xf32, #tpu.memory_space<vmem>>, %arg4: memref<384x128xbf16, #tpu.memory_space<vmem>>, %arg5: memref<1x8xf32, #tpu.memory_space<vmem>>, %arg6: memref<1x8xf32, #tpu.memory_space<vmem>>, %arg7: memref<128x8xf32, #tpu.memory_space<vmem>>, %arg8: memref<8x128xf32, #tpu.memory_space<vmem>>, %arg9: memref<32x128xf32, #tpu.memory_space<vmem>>) attributes {dimension_semantics = [], scalar_prefetch = 0 : i64, scratch_operands = 0 : i64, tpu.core_type = #tpu.core_type<tc>} {
    %c0 = arith.constant 0 : index
    %c0_0 = arith.constant 0 : index
    %0 = vector.load %arg0[%c0, %c0_0] : memref<32x128xf32, #tpu.memory_space<vmem>>, vector<32x128xf32>
    %1 = tpu.iota {dimensions = array<i32: 0>} : vector<32x1xi32>
    %c16_i32 = arith.constant 16 : i32
    %c0_i32 = arith.constant 0 : i32
    %2 = arith.cmpi eq, %c16_i32, %c0_i32 : i32
    %c1_i32 = arith.constant 1 : i32
    %3 = arith.select %2, %c1_i32, %c16_i32 : i32
    %4 = vector.broadcast %3 : i32 to vector<32x1xi32>
    %5 = arith.remsi %1, %4 : vector<32x1xi32>
    %c0_i32_1 = arith.constant 0 : i32
    %6 = vector.broadcast %c0_i32_1 : i32 to vector<32x1xi32>
    %7 = arith.cmpi ne, %5, %6 : vector<32x1xi32>
    %c0_i32_2 = arith.constant 0 : i32
    %8 = vector.broadcast %c0_i32_2 : i32 to vector<32x1xi32>
    %9 = arith.cmpi slt, %5, %8 : vector<32x1xi32>
    %c0_i32_3 = arith.constant 0 : i32
    %10 = arith.cmpi slt, %3, %c0_i32_3 : i32
    %11 = vector.broadcast %10 : i1 to vector<32x1xi1>
    %12 = vector.broadcast %11 : vector<32x1xi1> to vector<32x1xi1>
    %13 = arith.xori %9, %12 : vector<32x1xi1>
    %14 = arith.andi %13, %7 : vector<32x1xi1>
    %15 = vector.broadcast %3 : i32 to vector<32x1xi32>
    %16 = arith.addi %5, %15 : vector<32x1xi32>
    %17 = arith.select %14, %16, %5 : vector<32x1xi1>, vector<32x1xi32>
    %c1_i32_4 = arith.constant 1 : i32
    %18 = vector.broadcast %c1_i32_4 : i32 to vector<32x1xi32>
    %19 = arith.cmpi sge, %17, %18 : vector<32x1xi32>
    %20 = arith.extui %19 : vector<32x1xi1> to vector<32x1xi32>
    %21 = arith.sitofp %20 : vector<32x1xi32> to vector<32x1xf32>
    %22 = vector.shape_cast %21 : vector<32x1xf32> to vector<32x1xf32>
    %23 = vector.broadcast %22 : vector<32x1xf32> to vector<32x128xf32>
    %c15_i32 = arith.constant 15 : i32
    %24 = vector.broadcast %c15_i32 : i32 to vector<32x1xi32>
    %25 = arith.cmpi slt, %17, %24 : vector<32x1xi32>
    %26 = arith.extui %25 : vector<32x1xi1> to vector<32x1xi32>
    %27 = arith.sitofp %26 : vector<32x1xi32> to vector<32x1xf32>
    %28 = vector.shape_cast %27 : vector<32x1xf32> to vector<32x1xf32>
    %29 = vector.broadcast %28 : vector<32x1xf32> to vector<32x128xf32>
    %c1_i32_5 = arith.constant 1 : i32
    %30 = tpu.dynamic_rotate %0 by %c1_i32_5 dim 0 : vector<32x128xf32>, i32 -> vector<32x128xf32>
    %31 = arith.mulf %30, %23 : vector<32x128xf32>
    %c31_i32 = arith.constant 31 : i32
    %32 = tpu.dynamic_rotate %0 by %c31_i32 dim 0 : vector<32x128xf32>, i32 -> vector<32x128xf32>
    %33 = arith.mulf %32, %29 : vector<32x128xf32>
    %34 = arith.truncf %31 : vector<32x128xf32> to vector<32x128xbf16>
    %35 = arith.truncf %0 : vector<32x128xf32> to vector<32x128xbf16>
    %36 = arith.truncf %33 : vector<32x128xf32> to vector<32x128xbf16>
    %37 = tpu.concatenate %34, %35, %36 in 1 : vector<32x128xbf16>, vector<32x128xbf16>, vector<32x128xbf16> -> vector<32x384xbf16>
    %c0_6 = arith.constant 0 : index
    %c0_7 = arith.constant 0 : index
    %38 = vector.load %arg1[%c0_6, %c0_7] : memref<384x128xbf16, #tpu.memory_space<vmem>>, vector<384x128xbf16>
    %cst = arith.constant dense<0.000000e+00> : vector<32x128xf32>
    %39 = tpu.matmul %37, %38, %cst {dimension_numbers = #tpu.dot_dimension_numbers<[1], [0], [0], [1], [0, 0, 1, 1], [], []>} : vector<32x384xbf16>, vector<384x128xbf16>, vector<32x128xf32> -> vector<32x128xf32>
    %cst_8 = arith.constant dense<0.000000e+00> : vector<128xf32>
    %40 = vector.multi_reduction <add>, %39, %cst_8 [0] : vector<32x128xf32> to vector<128xf32>
    %41 = vector.shape_cast %40 : vector<128xf32> to vector<1x128xf32>
    %42 = arith.mulf %39, %39 : vector<32x128xf32>
    %cst_9 = arith.constant dense<0.000000e+00> : vector<128xf32>
    %43 = vector.multi_reduction <add>, %42, %cst_9 [0] : vector<32x128xf32> to vector<128xf32>
    %44 = vector.shape_cast %43 : vector<128xf32> to vector<1x128xf32>
    %45 = tpu.concatenate %41, %44 in 0 : vector<1x128xf32>, vector<1x128xf32> -> vector<2x128xf32>
    %c0_10 = arith.constant 0 : index
    %c0_11 = arith.constant 0 : index
    %46 = vector.load %arg7[%c0_10, %c0_11] : memref<128x8xf32, #tpu.memory_space<vmem>>, vector<128x8xf32>
    %cst_12 = arith.constant dense<0.000000e+00> : vector<2x8xf32>
    %47 = tpu.matmul %45, %46, %cst_12 {dimension_numbers = #tpu.dot_dimension_numbers<[1], [0], [0], [1], [0, 0, 1, 1], [], []>} : vector<2x128xf32>, vector<128x8xf32>, vector<2x8xf32> -> vector<2x8xf32>
    %cst_13 = arith.constant 0.001953125 : f32
    %48 = vector.broadcast %cst_13 : f32 to vector<2x8xf32>
    %49 = arith.mulf %47, %48 : vector<2x8xf32>
    %50 = vector.extract_strided_slice %49 {offsets = [0, 0], sizes = [1, 8], strides = [1, 1]} : vector<2x8xf32> to vector<1x8xf32>
    %51 = vector.extract_strided_slice %49 {offsets = [1, 0], sizes = [1, 8], strides = [1, 1]} : vector<2x8xf32> to vector<1x8xf32>
    %52 = arith.mulf %50, %50 : vector<1x8xf32>
    %53 = arith.subf %51, %52 : vector<1x8xf32>
    %cst_14 = arith.constant 0.000000e+00 : f32
    %54 = vector.broadcast %cst_14 : f32 to vector<1x8xf32>
    %55 = arith.maximumf %53, %54 : vector<1x8xf32>
    %c0_15 = arith.constant 0 : index
    %c0_16 = arith.constant 0 : index
    %56 = vector.load %arg2[%c0_15, %c0_16] : memref<1x8xf32, #tpu.memory_space<vmem>>, vector<1x8xf32>
    %cst_17 = arith.constant 9.99999974E-6 : f32
    %57 = vector.broadcast %cst_17 : f32 to vector<1x8xf32>
    %58 = arith.addf %55, %57 : vector<1x8xf32>
    %59 = math.rsqrt %58 : vector<1x8xf32>
    %60 = arith.mulf %56, %59 : vector<1x8xf32>
    %c0_18 = arith.constant 0 : index
    %c0_19 = arith.constant 0 : index
    %61 = vector.load %arg3[%c0_18, %c0_19] : memref<1x8xf32, #tpu.memory_space<vmem>>, vector<1x8xf32>
    %62 = arith.mulf %50, %60 : vector<1x8xf32>
    %63 = arith.subf %61, %62 : vector<1x8xf32>
    %64 = tpu.concatenate %60, %63 in 0 : vector<1x8xf32>, vector<1x8xf32> -> vector<2x8xf32>
    %c0_20 = arith.constant 0 : index
    %c0_21 = arith.constant 0 : index
    %65 = vector.load %arg8[%c0_20, %c0_21] : memref<8x128xf32, #tpu.memory_space<vmem>>, vector<8x128xf32>
    %cst_22 = arith.constant dense<0.000000e+00> : vector<2x128xf32>
    %66 = tpu.matmul %64, %65, %cst_22 {dimension_numbers = #tpu.dot_dimension_numbers<[1], [0], [0], [1], [0, 0, 1, 1], [], []>} : vector<2x8xf32>, vector<8x128xf32>, vector<2x128xf32> -> vector<2x128xf32>
    %67 = vector.extract_strided_slice %66 {offsets = [0, 0], sizes = [1, 128], strides = [1, 1]} : vector<2x128xf32> to vector<1x128xf32>
    %68 = vector.broadcast %67 : vector<1x128xf32> to vector<32x128xf32>
    %69 = arith.mulf %39, %68 : vector<32x128xf32>
    %70 = vector.extract_strided_slice %66 {offsets = [1, 0], sizes = [1, 128], strides = [1, 1]} : vector<2x128xf32> to vector<1x128xf32>
    %71 = vector.broadcast %70 : vector<1x128xf32> to vector<32x128xf32>
    %72 = arith.addf %69, %71 : vector<32x128xf32>
    %cst_23 = arith.constant 0.000000e+00 : f32
    %73 = vector.broadcast %cst_23 : f32 to vector<32x128xf32>
    %74 = arith.maximumf %72, %73 : vector<32x128xf32>
    %c1_i32_24 = arith.constant 1 : i32
    %75 = tpu.dynamic_rotate %74 by %c1_i32_24 dim 0 : vector<32x128xf32>, i32 -> vector<32x128xf32>
    %76 = arith.mulf %75, %23 : vector<32x128xf32>
    %c31_i32_25 = arith.constant 31 : i32
    %77 = tpu.dynamic_rotate %74 by %c31_i32_25 dim 0 : vector<32x128xf32>, i32 -> vector<32x128xf32>
    %78 = arith.mulf %77, %29 : vector<32x128xf32>
    %79 = arith.truncf %76 : vector<32x128xf32> to vector<32x128xbf16>
    %80 = arith.truncf %74 : vector<32x128xf32> to vector<32x128xbf16>
    %81 = arith.truncf %78 : vector<32x128xf32> to vector<32x128xbf16>
    %82 = tpu.concatenate %79, %80, %81 in 1 : vector<32x128xbf16>, vector<32x128xbf16>, vector<32x128xbf16> -> vector<32x384xbf16>
    %c0_26 = arith.constant 0 : index
    %c0_27 = arith.constant 0 : index
    %83 = vector.load %arg4[%c0_26, %c0_27] : memref<384x128xbf16, #tpu.memory_space<vmem>>, vector<384x128xbf16>
    %cst_28 = arith.constant dense<0.000000e+00> : vector<32x128xf32>
    %84 = tpu.matmul %82, %83, %cst_28 {dimension_numbers = #tpu.dot_dimension_numbers<[1], [0], [0], [1], [0, 0, 1, 1], [], []>} : vector<32x384xbf16>, vector<384x128xbf16>, vector<32x128xf32> -> vector<32x128xf32>
    %cst_29 = arith.constant dense<0.000000e+00> : vector<128xf32>
    %85 = vector.multi_reduction <add>, %84, %cst_29 [0] : vector<32x128xf32> to vector<128xf32>
    %86 = vector.shape_cast %85 : vector<128xf32> to vector<1x128xf32>
    %87 = arith.mulf %84, %84 : vector<32x128xf32>
    %cst_30 = arith.constant dense<0.000000e+00> : vector<128xf32>
    %88 = vector.multi_reduction <add>, %87, %cst_30 [0] : vector<32x128xf32> to vector<128xf32>
    %89 = vector.shape_cast %88 : vector<128xf32> to vector<1x128xf32>
    %90 = tpu.concatenate %86, %89 in 0 : vector<1x128xf32>, vector<1x128xf32> -> vector<2x128xf32>
    %c0_31 = arith.constant 0 : index
    %c0_32 = arith.constant 0 : index
    %91 = vector.load %arg7[%c0_31, %c0_32] : memref<128x8xf32, #tpu.memory_space<vmem>>, vector<128x8xf32>
    %cst_33 = arith.constant dense<0.000000e+00> : vector<2x8xf32>
    %92 = tpu.matmul %90, %91, %cst_33 {dimension_numbers = #tpu.dot_dimension_numbers<[1], [0], [0], [1], [0, 0, 1, 1], [], []>} : vector<2x128xf32>, vector<128x8xf32>, vector<2x8xf32> -> vector<2x8xf32>
    %cst_34 = arith.constant 0.001953125 : f32
    %93 = vector.broadcast %cst_34 : f32 to vector<2x8xf32>
    %94 = arith.mulf %92, %93 : vector<2x8xf32>
    %95 = vector.extract_strided_slice %94 {offsets = [0, 0], sizes = [1, 8], strides = [1, 1]} : vector<2x8xf32> to vector<1x8xf32>
    %96 = vector.extract_strided_slice %94 {offsets = [1, 0], sizes = [1, 8], strides = [1, 1]} : vector<2x8xf32> to vector<1x8xf32>
    %97 = arith.mulf %95, %95 : vector<1x8xf32>
    %98 = arith.subf %96, %97 : vector<1x8xf32>
    %cst_35 = arith.constant 0.000000e+00 : f32
    %99 = vector.broadcast %cst_35 : f32 to vector<1x8xf32>
    %100 = arith.maximumf %98, %99 : vector<1x8xf32>
    %c0_36 = arith.constant 0 : index
    %c0_37 = arith.constant 0 : index
    %101 = vector.load %arg5[%c0_36, %c0_37] : memref<1x8xf32, #tpu.memory_space<vmem>>, vector<1x8xf32>
    %cst_38 = arith.constant 9.99999974E-6 : f32
    %102 = vector.broadcast %cst_38 : f32 to vector<1x8xf32>
    %103 = arith.addf %100, %102 : vector<1x8xf32>
    %104 = math.rsqrt %103 : vector<1x8xf32>
    %105 = arith.mulf %101, %104 : vector<1x8xf32>
    %c0_39 = arith.constant 0 : index
    %c0_40 = arith.constant 0 : index
    %106 = vector.load %arg6[%c0_39, %c0_40] : memref<1x8xf32, #tpu.memory_space<vmem>>, vector<1x8xf32>
    %107 = arith.mulf %95, %105 : vector<1x8xf32>
    %108 = arith.subf %106, %107 : vector<1x8xf32>
    %109 = tpu.concatenate %105, %108 in 0 : vector<1x8xf32>, vector<1x8xf32> -> vector<2x8xf32>
    %c0_41 = arith.constant 0 : index
    %c0_42 = arith.constant 0 : index
    %110 = vector.load %arg8[%c0_41, %c0_42] : memref<8x128xf32, #tpu.memory_space<vmem>>, vector<8x128xf32>
    %cst_43 = arith.constant dense<0.000000e+00> : vector<2x128xf32>
    %111 = tpu.matmul %109, %110, %cst_43 {dimension_numbers = #tpu.dot_dimension_numbers<[1], [0], [0], [1], [0, 0, 1, 1], [], []>} : vector<2x8xf32>, vector<8x128xf32>, vector<2x128xf32> -> vector<2x128xf32>
    %112 = vector.extract_strided_slice %111 {offsets = [0, 0], sizes = [1, 128], strides = [1, 1]} : vector<2x128xf32> to vector<1x128xf32>
    %113 = vector.broadcast %112 : vector<1x128xf32> to vector<32x128xf32>
    %114 = arith.mulf %84, %113 : vector<32x128xf32>
    %115 = vector.extract_strided_slice %111 {offsets = [1, 0], sizes = [1, 128], strides = [1, 1]} : vector<2x128xf32> to vector<1x128xf32>
    %116 = vector.broadcast %115 : vector<1x128xf32> to vector<32x128xf32>
    %117 = arith.addf %114, %116 : vector<32x128xf32>
    %118 = arith.addf %117, %0 : vector<32x128xf32>
    %cst_44 = arith.constant 0.000000e+00 : f32
    %119 = vector.broadcast %cst_44 : f32 to vector<32x128xf32>
    %120 = arith.maximumf %118, %119 : vector<32x128xf32>
    %c0_45 = arith.constant 0 : index
    %c0_46 = arith.constant 0 : index
    %121 = vector.load %arg9[%c0_45, %c0_46] : memref<32x128xf32, #tpu.memory_space<vmem>>, vector<32x128xf32>
    tpu.vector_store %arg9[%c0_45, %c0_46], %120 {strides = array<i32>} : memref<32x128xf32, #tpu.memory_space<vmem>>, vector<32x128xf32>,
    return
  }
}

</mosaic_0001>

<bundles_post_ra>
// kernel: tpu_custom_call.1
= control target key start
LH: loop header
LB: loop body
LE: loop exit
PB: predicated region body
PF: predicated region fallthrough
CT: control target
= control target key end

     0   :  { %14 = vsyncpa [#allocation3], 0  ;;  %s2134_s0 = inlined_call_operand.vmem [shape: f32[32,128], index: 0, kind: input, shape index: {}]   ;;  %s2135_s1 = inlined_call_operand.hbm [shape: bf16[384,128], index: 1, kind: input, shape index: {}]   ;;  %s2136_s2 = inlined_call_operand.vmem [shape: f32[1,8], index: 2, kind: input, shape index: {}]   ;;  %s2137_s3 = inlined_call_operand.vmem [shape: f32[1,8], index: 3, kind: input, shape index: {}]   ;;  %s2138_s4 = inlined_call_operand.hbm [shape: bf16[384,128], index: 4, kind: input, shape index: {}]   ;;  %s2139_s5 = inlined_call_operand.vmem [shape: f32[1,8], index: 5, kind: input, shape index: {}]   ;;  %s2140_s6 = inlined_call_operand.vmem [shape: f32[1,8], index: 6, kind: input, shape index: {}]   ;;  %s2141_s7 = inlined_call_operand.vmem [shape: f32[128,8], index: 7, kind: input, shape index: {}]   ;;  %s2142_s8 = inlined_call_operand.vmem [shape: f32[8,128], index: 8, kind: input, shape index: {}]   ;;  %s2143_s9 = inlined_call_operand.hbm [shape: f32[32,128], index: 9, kind: output, shape index: {}]  }
   0x1   :  { %15 = vsyncpa [#allocation6], 0 }
   0x2   :  { %16 = vsyncpa [#allocation4], 0  ;;  %s1749_s30 = smov [#allocation2]   ;;  %s1677_s13 = scalar_lea.hbm %s2135_s1, 3072 }
   0x3   :  { %s24_s10 = sshll.u32 %s1749_s30, 4  ;;  %p1678_p0 = scmp.ne.s32.totalorder %s2135_s1, %s1677_s13  ;;  %s25_s10 = int_to_ptr.vmem [resolvable:$true] %s24_s10 }
   0x4   :  { %p1681_p1 = scmp.lt.u32.totalorder %s1677_s13, %s2135_s1 }
   0x6   :  { %p1683_p2 = pnand %p1681_p1, %p1678_p0 }
   0x8   :  { %1686 = shalt.err (!%p1683_p2)
}
   0x9   :  { %s1687_s18 = scalar_lea.vmem %s25_s10, 3072  ;;  %p1692_p4 = scmp.lt.s32.totalorder %s25_s10, %s25_s10 }
   0xa   :  { %p1688_p3 = scmp.ne.s32.totalorder %s25_s10, %s1687_s18  ;;  %p1693_p5 = scmp.lt.s32.totalorder %s1687_s18, %s1687_s18 }
   0xc   :  { %p1694_p6 = por %p1693_p5, %p1692_p4 }
   0xe   :  { %p1695_p7 = pnand %p1694_p6, %p1688_p3 }
  0x10   :  { %1698 = shalt.err (!%p1695_p7)
}
  0x11   :  { %s1750_s19 = smov 64   ;;  %s1751_s20 = smov 4  }
  0x12   :  { %30 = dma.hbm_to_vmem [thread:$0]  %s2135_s1, 3072, %s25_s10, [#allocation3], %s1750_s19, %s1750_s19, %s1751_s20  }
  0x13   :  { %s1752_s23 = smov [#allocation5]   ;;  %s1699_s27 = scalar_lea.hbm %s2138_s4, 3072 }
  0x14   :  { %s40_s24 = sshll.u32 %s1752_s23, 4  ;;  %p1700_p8 = scmp.ne.s32.totalorder %s2138_s4, %s1699_s27  ;;  %s41_s24 = int_to_ptr.vmem [resolvable:$true] %s40_s24 }
  0x15   :  { %p1703_p9 = scmp.lt.u32.totalorder %s1699_s27, %s2138_s4 }
  0x17   :  { %p1705_p10 = pnand %p1703_p9, %p1700_p8 }
  0x19   :  { %1708 = shalt.err (!%p1705_p10)
}
  0x1a   :  { %s1709_s12 = scalar_lea.vmem %s41_s24, 3072  ;;  %p1714_p12 = scmp.lt.s32.totalorder %s41_s24, %s41_s24 }
  0x1b   :  { %p1710_p11 = scmp.ne.s32.totalorder %s41_s24, %s1709_s12  ;;  %p1715_p13 = scmp.lt.s32.totalorder %s1709_s12, %s1709_s12 }
  0x1d   :  { %p1716_p0 = por %p1715_p13, %p1714_p12 }
  0x1f   :  { %p1717_p1 = pnand %p1716_p0, %p1710_p11 }
  0x21   :  { %1720 = shalt.err (!%p1717_p1)
}
  0x22   :  { %46 = dma.hbm_to_vmem [thread:$0]  %s2138_s4, 3072, %s41_s24, [#allocation6], %s1750_s19, %s1750_s19, %s1751_s20  }
  0x23   :  { %1743 = dma.done.wait [#allocation3], 3072  }
  0x24   :  { %1744 = vsyncadd [#allocation3], 4294964224 }
  0x25   :  { %1745 = dma.done.wait [#allocation6], 3072  }
  0x26   :  { %1746 = vsyncadd [#allocation6], 4294964224  ;;  %v1625_v0 = vld [vmem:[#allocation2 + $0x40] sm:$0xff]   ;;  %v1628_v3 = vld [vmem:[#allocation2 + $0x48] sm:$0xff]   ;;  %v66_v4 = vlaneseq  ;;  %v1753_v34 = vmov 0.0   ;;  %vm1755_vm6 = vmmov 0  }
  0x27   :  { %v1626_v1 = vld [vmem:[#allocation2] sm:$0xff]   ;;  %1332 = vmatprep.subr.bf16.mxu0 %v1625_v0  ;;  %v1629_v5 = vld [vmem:[#allocation2 + $0x8] sm:$0xff]   ;;  %v1631_v7 = vld [vmem:[#allocation2 + $0x50] sm:$0xff]   ;;  %vm487_vm7 = vcmask 1040384   ;;  %vm614_vm8 = vcmask 64512  }
  0x28   :  { %v1627_v2 = vld [vmem:[#allocation2 + $0x80] sm:$0xff]   ;;  %1333 = vmatpush3.bf16.msra.mxu0 %v1626_v1  ;;  %v1630_v6 = vld [vmem:[#allocation2 + $0x88] sm:$0xff]   ;;  %v1632_v8 = vld [vmem:[#allocation2 + $0x10] sm:$0xff]   ;;  %v1834_v9 = vshrl.u32 %v66_v4, 7 }
  0x29   :  { %1446 = vmatprep.subr.bf16.mxu1 %v1627_v2  ;;  %1334 = vmatprep.subr.bf16.mxu0 %v1628_v3  ;;  %v1633_v10 = vld [vmem:[#allocation2 + $0x90] sm:$0xff]   ;;  %v1634_v11 = vld [vmem:[#allocation2 + $0x58] sm:$0xff]   ;;  %v1637_v15 = vld [vmem:[#allocation2 + $0x60] sm:$0xff]  }
  0x2a   :  { %1447 = vmatpush3.bf16.msra.mxu1 %v1627_v2  ;;  %v1635_v12 = vld [vmem:[#allocation2 + $0x18] sm:$0xff]   ;;  %v68_v14 = vadd.s32 8, %v1834_v9  ;;  %v70_v16 = vadd.s32 24, %v1834_v9  ;;  %v69_v17 = vadd.s32 16, %v1834_v9  ;;  %v1639_v18 = vld [vmem:[#allocation2 + $0xa0] sm:$0xff]   ;;  %v75_v19 = vand.u32 15, %v1834_v9 }
  0x2b   :  { %1448 = vmatprep.subr.bf16.mxu1 %v1630_v6  ;;  %v1636_v13 = vld [vmem:[#allocation2 + $0x98] sm:$0xff]   ;;  %v1638_v20 = vld [vmem:[#allocation2 + $0x20] sm:$0xff]   ;;  %v1640_v22 = vld [vmem:[#allocation2 + $0x68] sm:$0xff]   ;;  %vm147_vm0 = vcmp.lt.s32.totalorder %v1834_v9, 1  ;;  %vm160_vm5 = vcmp.lt.s32.totalorder %v1834_v9, 7 }
  0x2c   :  { %1335 = vmatpush3.bf16.msra.mxu0 %v1629_v5  ;;  %v82_v21 = vand.u32 15, %v68_v14  ;;  %v96_v23 = vand.u32 15, %v70_v16  ;;  %v89_v24 = vand.u32 15, %v69_v17  ;;  %v1642_v25 = vld [vmem:[#allocation2 + $0xa8] sm:$0xff]   ;;  %vm1841_vm1 = vcmp.ge.s32.totalorder %v75_v19, 1  ;;  %v1643_v29 = vld [vmem:[#allocation2 + $0x70] sm:$0xff]  }
  0x2d   :  { %1336 = vmatprep.subr.bf16.mxu0 %v1631_v7  ;;  %v1641_v27 = vld [vmem:[#allocation2 + $0x28] sm:$0xff]   ;;  %v1644_v31 = vld [vmem:[#allocation2 + $0x30] sm:$0xff]   ;;  %v1646_v33 = vld [vmem:[#allocation2 + $0x78] sm:$0xff]   ;;  %v1857_v35 = vsel %vm1841_vm1, 1.0, %v1753_v34 }
  0x2e   :  { %1449 = vmatpush3.bf16.msra.mxu1 %v1630_v6  ;;  %vm1845_vm2 = vcmp.lt.s32.totalorder %v82_v21, 15  ;;  %vm1849_vm3 = vcmp.lt.s32.totalorder %v96_v23, 15  ;;  %vm121_vm4 = vcmp.ge.s32.totalorder %v89_v24, 1  ;;  %v1645_v32 = vld [vmem:[#allocation2 + $0xb0] sm:$0xff]   ;;  %v1648_v36 = vld [vmem:[#allocation2 + $0xb8] sm:$0xff]   ;;  %v1862_v37 = vld [vmem:[%s2134_s0] sm:$0xff] }
  0x2f   :  { %1450 = vmatprep.subr.bf16.mxu1 %v1633_v10  ;;  %v1867_v38 = vld [vmem:[%s2134_s0 + $0x8] sm:$0xff]  ;;  %v1872_v39 = vld [vmem:[%s2134_s0 + $0x18] sm:$0xff]  ;;  %v1877_v40 = vsel %vm1845_vm2, 1.0, %v1753_v34  ;;  %v1882_v41 = vsel %vm1849_vm3, 1.0, %v1753_v34  ;;  %v1885_v42 = vsel %vm121_vm4, 1.0, %v1753_v34  ;;  %v143_v43 = vrot.slane %v1862_v37, 7 }
  0x30   :  { %1337 = vmatpush3.bf16.msra.mxu0 %v1632_v8  ;;  %v144_v44 = vrot.slane %v1867_v38, 7  ;;  %v171_v45 = vpack.c.bf16 %v1867_v38, %v1862_v37  ;;  %v146_v46 = vrot.slane %v1872_v39, 7  ;;  %v1895_v47 = vld [vmem:[%s2134_s0 + $0x10] sm:$0xff]  ;;  %v156_v48 = vrot.slane %v1862_v37, 1  ;;  %v1647_v52 = vld [vmem:[#allocation2 + $0x38] sm:$0xff]   ;;  %v489_v7 = vld [vmem:[%s2141_s7] sm:$0xff] }
  0x31   :  { %1338 = vmatprep.subr.bf16.mxu0 %v1634_v11  ;;  %v157_v49 = vrot.slane %v1867_v38, 1  ;;  %v158_v50 = vrot.slane %v1895_v47, 1  ;;  %v159_v51 = vrot.slane %v1872_v39, 1  ;;  %v145_v55 = vrot.slane %v1895_v47, 7  ;;  %v490_v8 = vld [vmem:[%s2141_s7 + $0x8] sm:$0xff]  ;;  %v496_v19 = vld [vmem:[%s2141_s7 + $0x38] sm:$0xff] }
  0x32   :  { %1451 = vmatpush3.bf16.msra.mxu1 %v1633_v10  ;;  %399 = vmatprep.mubr.bf16.mxu0 %v171_v45  ;;  %v150_v53 = vsel %vm147_vm0, %v143_v43, %v144_v44  ;;  %v151_v54 = vsel %vm147_vm0, %v146_v46, %v143_v43  ;;  %v172_v1 = vpack.c.bf16 %v1872_v39, %v1895_v47  ;;  %v1754_v11 = vmov 0.0|0.0   ;;  %v494_v16 = vld [vmem:[%s2141_s7 + $0x28] sm:$0xff]  ;;  %v497_v21 = vld [vmem:[%s2141_s7 + $0x40] sm:$0xff]  ;;  %v499_v24 = vld [vmem:[%s2141_s7 + $0x50] sm:$0xff] }
  0x33   :  { %1452 = vmatprep.subr.bf16.mxu1 %v1636_v13  ;;  %v152_v56 = vmul.f32 %v1857_v35, %v151_v54  ;;  %v162_v57 = vsel %vm160_vm5, %v157_v49, %v158_v50  ;;  %v163_v58 = vsel %vm160_vm5, %v156_v48, %v157_v49  ;;  %v161_v60 = vsel %vm160_vm5, %v158_v50, %v159_v51  ;;  %v502_v28 = vld [vmem:[%s2141_s7 + $0x68] sm:$0xff]  ;;  %v503_v30 = vld [vmem:[%s2141_s7 + $0x70] sm:$0xff] }
  0x34   :  { %1339 = vmatpush3.bf16.msra.mxu0 %v1635_v12  ;;  %v166_v59 = vmul.f32 %v1877_v40, %v162_v57  ;;  %v164_v61 = vsel %vm160_vm5, %v159_v51, %v156_v48  ;;  %v149_v2 = vsel %vm147_vm0, %v144_v44, %v145_v55  ;;  %v148_v5 = vsel %vm147_vm0, %v145_v55, %v146_v46  ;;  %v491_v12 = vld [vmem:[%s2141_s7 + $0x10] sm:$0xff] }
  0x35   :  { %1340 = vmatprep.subr.bf16.mxu0 %v1637_v15  ;;  %v169_v62 = vpack.c.bf16 %v150_v53, %v152_v56  ;;  %v168_v63 = vmul.f32 %v1882_v41, %v164_v61  ;;  %v154_v4 = vmul.f32 %v1885_v42, %v149_v2  ;;  %v1931_v10 = vpack.c.bf16 %v490_v8, %v489_v7  ;;  %v493_v15 = vld [vmem:[%s2141_s7 + $0x20] sm:$0xff] }
  0x36   :  { %1453 = vmatpush3.bf16.msra.mxu1 %v1636_v13  ;;  %v173_v0 = vpack.c.bf16 %v166_v59, %v163_v58  ;;  %v492_v13 = vld [vmem:[%s2141_s7 + $0x18] sm:$0xff]  ;;  %v1952_v17 = vpack.c.bf16 %v494_v16, %v493_v15 }
  0x37   :  { %1454 = vmatprep.subr.bf16.mxu1 %v1639_v18  ;;  %v174_v3 = vpack.c.bf16 %v168_v63, %v161_v60  ;;  %v170_v6 = vpack.c.bf16 %v148_v5, %v154_v4  ;;  %v1942_v14 = vpack.c.bf16 %v492_v13, %v491_v12 }
  0x38   :  { %1341 = vmatpush3.bf16.msra.mxu0 %v1638_v20  ;;  %1462 = vmatprep.mubr.bf16.mxu1 %v173_v0 }
  0x39   :  { %1342 = vmatprep.subr.bf16.mxu0 %v1640_v22  ;;  %v498_v22 = vld [vmem:[%s2141_s7 + $0x48] sm:$0xff] }
  0x3a   :  { %1455 = vmatpush3.bf16.msra.mxu1 %v1639_v18  ;;  %v495_v18 = vld [vmem:[%s2141_s7 + $0x30] sm:$0xff]  ;;  %v1972_v23 = vpack.c.bf16 %v498_v22, %v497_v21 }
  0x3b   :  { %1456 = vmatprep.subr.bf16.mxu1 %v1642_v25  ;;  %v1962_v20 = vpack.c.bf16 %v496_v19, %v495_v18 }
  0x3c   :  { %1343 = vmatpush3.bf16.msra.mxu0 %v1641_v27  ;;  %v501_v27 = vld [vmem:[%s2141_s7 + $0x60] sm:$0xff] }
  0x3d   :  { %1344 = vmatprep.subr.bf16.mxu0 %v1643_v29  ;;  %v1992_v29 = vpack.c.bf16 %v502_v28, %v501_v27 }
  0x3e   :  { %1457 = vmatpush3.bf16.msra.mxu1 %v1642_v25  ;;  %v500_v25 = vld [vmem:[%s2141_s7 + $0x58] sm:$0xff] }
  0x3f   :  { %1458 = vmatprep.subr.bf16.mxu1 %v1645_v32  ;;  %v1982_v26 = vpack.c.bf16 %v500_v25, %v499_v24 }
  0x40   :  { %1345 = vmatpush3.bf16.msra.mxu0 %v1644_v31  ;;  %v504_v31 = vld [vmem:[%s2141_s7 + $0x78] sm:$0xff] }
  0x41   :  { %1346 = vmatprep.subr.bf16.mxu0 %v1646_v33 }
  0x42   :  { %1459 = vmatpush3.bf16.msra.mxu1 %v1645_v32  ;;  %v2005_v32 = vpack.c.bf16 %v504_v31, %v503_v30  ;;  %v2033_v30 = vld [vmem:[%s2142_s8] sm:$0xff] }
  0x43   :  { %1460 = vmatprep.subr.bf16.mxu1 %v1648_v36  ;;  %v1649_v31 = vld [vmem:[#allocation5 + $0x40] sm:$0xff]  }
  0x44   :  { %1347 = vmatpush3.bf16.msra.mxu0 %v1647_v52 }
  0x45   :  { %1566 = vmatprep.subr.bf16.mxu0 %v1754_v11 }
  0x46   :  { %1461 = vmatpush3.bf16.msra.mxu1 %v1648_v36 }
  0x47   :  { %400 = vmatmul.mubr.bf16.vlgmr.msra.gmra.mrb[0].mxu0 %v169_v62  ;;  %1501 = vmatprep.subr.mxu1 %v1753_v34 }
  0x48   :  { %407 = vmatprep.mubr.bf16.mxu0 %v172_v1  ;;  %1568 = vmatpush3.bf16.msra.mxu0 %v1931_v10 }
  0x49   :  { %1463 = vmatmul.mubr.bf16.vlgmr.msra.gmra.mrb[0].mxu1 %v174_v3  ;;  %1569 = vmatprep.subr.bf16.mxu0 %v1754_v11 }
  0x4a   :  { %1503 = vmatprep.mubr.msk.f32.mxu1 %vm1755_vm6, %v1753_v34  ;;  %1502 = vmatpush3.msra.mxu1 %v2033_v30 }
  0x4b   :  { %1389 = vmatprep.subr.bf16.mxu1 %v1649_v31  ;;  %v1665_v31 = vld [vmem:[#allocation5 + $0x28] sm:$0xff]  }
  0x4c   :  { %1571 = vmatpush3.bf16.msra.mxu0 %v1942_v14 }
  0x4d   :  { %1572 = vmatprep.subr.bf16.mxu0 %v1754_v11 }
  0x4f   :  { %408 = vmatmul.mubr.bf16.gmra.mrb[4].mxu0 %v170_v6 }
  0x50   :  { %1574 = vmatpush3.bf16.msra.mxu0 %v1952_v17  ;;  %1498 = vmatprep.mubr.msk.f32.mxu0 %vm1755_vm6, %v1753_v34 }
  0x51   :  { %1575 = vmatprep.subr.bf16.mxu0 %v1754_v11 }
  0x54   :  { %1577 = vmatpush3.bf16.msra.mxu0 %v1962_v20 }
  0x55   :  { %1578 = vmatprep.subr.bf16.mxu0 %v1754_v11 }
  0x58   :  { %1580 = vmatpush3.bf16.msra.mxu0 %v1972_v23 }
  0x59   :  { %1581 = vmatprep.subr.bf16.mxu0 %v1754_v11 }
  0x5c   :  { %1583 = vmatpush3.bf16.msra.mxu0 %v1982_v26 }
  0x5d   :  { %1584 = vmatprep.subr.bf16.mxu0 %v1754_v11 }
  0x60   :  { %1586 = vmatpush3.bf16.msra.mxu0 %v1992_v29 }
  0x61   :  { %1587 = vmatprep.subr.bf16.mxu0 %v1754_v11 }
  0x64   :  { %1589 = vmatpush3.bf16.msra.mxu0 %v2005_v32 }
 0x11a   :  { %v1348_v33 = vpop.f32.mrb[0].mxu0 }
 0x11b   :  { %v1349_v36 = vpop.f32.mrb[1].mxu0 }
 0x11c   :  { %v1350_v43 = vadd.f32 %v1349_v36, %v1348_v33  ;;  %v1351_v44 = vpop.f32.mrb[2].mxu0  ;;  %v1464_v45 = vpop.f32.mrb[0].mxu1  ;;  %v1651_v33 = vld [vmem:[#allocation5 + $0x80] sm:$0xff]   ;;  %v1654_v36 = vld [vmem:[#allocation5 + $0x88] sm:$0xff]  }
 0x11d   :  { %v1352_v46 = vpop.f32.mrb[3].mxu0  ;;  %v450_v48 = vpop.f32.mrb[1].mxu1  ;;  %1506 = vmatprep.subr.bf16.mxu0 %v1651_v33 }
 0x11e   :  { %v1353_v49 = vadd.f32 %v1352_v46, %v1351_v44  ;;  %v2009_v50 = vadd.f32 %v1350_v43, %v450_v48  ;;  %v1465_v51 = vpop.f32.mrb[2].mxu1  ;;  %v1657_v43 = vld [vmem:[#allocation5 + $0x90] sm:$0xff]   ;;  %v1660_v44 = vld [vmem:[#allocation5 + $0x98] sm:$0xff]  }
 0x11f   :  { %v453_v52 = vpop.f32.mrb[3].mxu1 }
 0x120   :  { %v2011_v53 = vadd.f32 %v1353_v49, %v453_v52  ;;  %v474_v60 = vmul.f32 %v2009_v50, %v2009_v50 }
 0x122   :  { %v1354_v54 = vpop.f32.mrb[4].mxu0  ;;  %v475_v56 = vmul.f32 %v2011_v53, %v2011_v53  ;;  %v465_v61 = vadd.f32 %v2011_v53, %v2009_v50 }
 0x123   :  { %v1355_v55 = vpop.f32.mrb[5].mxu0 }
 0x124   :  { %v1356_v57 = vadd.f32 %v1355_v55, %v1354_v54  ;;  %v1357_v58 = vpop.f32.mrb[6].mxu0  ;;  %v478_v0 = vadd.f32 %v475_v56, %v474_v60  ;;  %v1756_v56 = vmov 1966171168  }
 0x125   :  { %v1358_v59 = vpop.f32.mrb[7].mxu0 }
 0x126   :  { %v2019_v62 = vadd.f32 %v1464_v45, %v1356_v57  ;;  %v1359_v63 = vadd.f32 %v1358_v59, %v1357_v58  ;;  %v587_v57 = vunpack.c.l.s4 %v1756_v56 }
 0x128   :  { %v466_v1 = vadd.f32 %v465_v61, %v2019_v62  ;;  %v476_v2 = vmul.f32 %v2019_v62, %v2019_v62  ;;  %v2024_v3 = vadd.f32 %v1465_v51, %v1359_v63  ;;  %v588_v58 = vunpack.c.0.s8 %v587_v57 }
 0x12a   :  { %v479_v4 = vadd.f32 %v478_v0, %v476_v2  ;;  %v467_v5 = vadd.f32 %v466_v1, %v2024_v3  ;;  %v477_v6 = vmul.f32 %v2024_v3, %v2024_v3  ;;  %v2037_v59 = vsub.s32 %v588_v58, %v1834_v9  ;;  %v582_v0 = vld [vmem:[%s2136_s2] sm:$0x1] }
 0x12c   :  { %v468_v7 = vrot.slane %v467_v5, 4  ;;  %v480_v8 = vadd.f32 %v479_v4, %v477_v6  ;;  %v603_v4 = vld [vmem:[%s2137_s3] sm:$0x1]  ;;  %v2048_v6 = vsub.s32 0, %v1834_v9 }
 0x12e   :  { %v469_v12 = vadd.f32 %v468_v7, %v467_v5  ;;  %v481_v13 = vrot.slane %v480_v8, 4 }
 0x130   :  { %v470_v15 = vrot.slane %v469_v12, 2  ;;  %v482_v16 = vadd.f32 %v481_v13, %v480_v8  ;;  %v1652_v13 = vld [vmem:[#allocation5 + $0x48] sm:$0xff]  }
 0x132   :  { %v471_v18 = vadd.f32 %v470_v15, %v469_v12  ;;  %v483_v19 = vrot.slane %v482_v16, 2  ;;  %v1650_v12 = vld [vmem:[#allocation5] sm:$0xff]  }
 0x134   :  { %v472_v21 = vrot.slane %v471_v18, 1  ;;  %v484_v22 = vadd.f32 %v483_v19, %v482_v16  ;;  %v1653_v16 = vld [vmem:[#allocation5 + $0x8] sm:$0xff]   ;;  %v1656_v19 = vld [vmem:[#allocation5 + $0x10] sm:$0xff]  }
 0x136   :  { %v485_v24 = vrot.slane %v484_v22, 1  ;;  %v473_v25 = vadd.f32 %v472_v21, %v471_v18  ;;  %v1655_v18 = vld [vmem:[#allocation5 + $0x50] sm:$0xff]   ;;  %v1658_v21 = vld [vmem:[#allocation5 + $0x58] sm:$0xff]  }
 0x138   :  { %v486_v27 = vadd.f32 %v485_v24, %v484_v22  ;;  %v1659_v22 = vld [vmem:[#allocation5 + $0x18] sm:$0xff]   ;;  %v1661_v24 = vld [vmem:[#allocation5 + $0x60] sm:$0xff]  }
 0x13a   :  { %v488_v28 = vsel %vm487_vm7, %v473_v25, %v486_v27  ;;  %v1662_v25 = vld [vmem:[#allocation5 + $0x20] sm:$0xff]  }
 0x13b   :  { %1499 = vmatmul.mubr.f32.vlgmr.msra.gmra.mrb[8].mxu0 %v488_v28  ;;  %v1663_v27 = vld [vmem:[#allocation5 + $0xa0] sm:$0xff]   ;;  %v1664_v28 = vld [vmem:[#allocation5 + $0x68] sm:$0xff]  }
 0x13c   :  { %1507 = vmatpush3.bf16.msra.mxu0 %v1651_v33  ;;  %v1666_v33 = vld [vmem:[#allocation5 + $0xa8] sm:$0xff]  }
 0x13d   :  { %1508 = vmatprep.subr.bf16.mxu0 %v1654_v36 }
 0x140   :  { %1509 = vmatpush3.bf16.msra.mxu0 %v1654_v36  ;;  %v1667_v36 = vld [vmem:[#allocation5 + $0x70] sm:$0xff]  }
 0x141   :  { %1510 = vmatprep.subr.bf16.mxu0 %v1657_v43 }
 0x144   :  { %1511 = vmatpush3.bf16.msra.mxu0 %v1657_v43  ;;  %v1668_v43 = vld [vmem:[#allocation5 + $0x30] sm:$0xff]  }
 0x145   :  { %1512 = vmatprep.subr.bf16.mxu0 %v1660_v44 }
 0x148   :  { %1513 = vmatpush3.bf16.msra.mxu0 %v1660_v44  ;;  %v1669_v44 = vld [vmem:[#allocation5 + $0xb0] sm:$0xff]  }
 0x149   :  { %1514 = vmatprep.subr.bf16.mxu0 %v1663_v27 }
 0x14c   :  { %1515 = vmatpush3.bf16.msra.mxu0 %v1663_v27 }
 0x14d   :  { %1516 = vmatprep.subr.bf16.mxu0 %v1666_v33 }
 0x150   :  { %1517 = vmatpush3.bf16.msra.mxu0 %v1666_v33 }
 0x151   :  { %1518 = vmatprep.subr.bf16.mxu0 %v1669_v44 }
 0x154   :  { %1519 = vmatpush3.bf16.msra.mxu0 %v1669_v44 }
 0x20e   :  { %v571_v45 = vpop.f32.mrb[8].mxu0 }
 0x20f   :  { %v575_v46 = vmul.f32 0.001953125, %v571_v45  ;;  %v1500_v48 = vpop.f32.mrb[9].mxu0  ;;  %v1670_v45 = vld [vmem:[#allocation5 + $0x78] sm:$0xff]  }
 0x210   :  { %v1672_v48 = vld [vmem:[#allocation5 + $0xb8] sm:$0xff]  }
 0x211   :  { %v576_v49 = vmul.f32 %v575_v46, %v575_v46  ;;  %1520 = vmatprep.subr.bf16.mxu0 %v1672_v48 }
 0x212   :  { %1521 = vmatpush3.bf16.msra.mxu0 %v1672_v48 }
 0x213   :  { %v578_v51 = vrot.slane %v576_v49, 7  ;;  %1561 = vmatprep.subr.mxu0 %v1753_v34  ;;  %v698_v49 = vsub.s32 1, %v1834_v9 }
 0x215   :  { %v580_v52 = vsub.f32 %v575_v46, %v578_v51 }
 0x217   :  { %v581_v54 = vmax.f32 %v580_v52, 0.0 }
 0x219   :  { %v583_v55 = vadd.f32 1e-05, %v581_v54 }
 0x21b   :  { %1673 = vrsqrt.f32 %v583_v55 }
 0x225   :  { %v1674_v60 = vpop.eup %1673 }
 0x226   :  { %v592_v61 = vrot.slane %v1674_v60, %v2037_v59 }
 0x228   :  { %v593_v63 = vcombine.high %v592_v61, %v592_v61 }
 0x22a   :  { %v600_v1 = vrot.slane %v593_v63, %v2037_v59 }
 0x22c   :  { %v602_v2 = vmul.f32 %v600_v1, %v582_v0 }
 0x22e   :  { %v604_v5 = vmul.f32 %v602_v2, %v575_v46  ;;  %v1671_v46 = vld [vmem:[#allocation5 + $0x38] sm:$0xff]  }
 0x230   :  { %v605_v7 = vsub.f32 %v603_v4, %v604_v5 }
 0x232   :  { %v610_v8 = vrot.slane %v605_v7, %v2048_v6 }
 0x234   :  { %v612_v15 = vsel %vm487_vm7, %v602_v2, %v610_v8 }
 0x235   :  { %1504 = vmatmul.mubr.msk.f32.vlgmr.msra.gmra.mrb[4].mxu1 %vm614_vm8, %v612_v15 }
 0x236   :  { %1390 = vmatpush3.bf16.msra.mxu1 %v1650_v12 }
 0x237   :  { %1391 = vmatprep.subr.bf16.mxu1 %v1652_v13 }
 0x23a   :  { %1392 = vmatpush3.bf16.msra.mxu1 %v1653_v16 }
 0x23b   :  { %1393 = vmatprep.subr.bf16.mxu1 %v1655_v18 }
 0x23e   :  { %1394 = vmatpush3.bf16.msra.mxu1 %v1656_v19 }
 0x23f   :  { %1395 = vmatprep.subr.bf16.mxu1 %v1658_v21 }
 0x242   :  { %1396 = vmatpush3.bf16.msra.mxu1 %v1659_v22 }
 0x243   :  { %1397 = vmatprep.subr.bf16.mxu1 %v1661_v24 }
 0x246   :  { %1398 = vmatpush3.bf16.msra.mxu1 %v1662_v25 }
 0x247   :  { %1399 = vmatprep.subr.bf16.mxu1 %v1664_v28 }
 0x24a   :  { %1400 = vmatpush3.bf16.msra.mxu1 %v1665_v31 }
 0x24b   :  { %1401 = vmatprep.subr.bf16.mxu1 %v1667_v36 }
 0x24e   :  { %1402 = vmatpush3.bf16.msra.mxu1 %v1668_v43 }
 0x24f   :  { %1403 = vmatprep.subr.bf16.mxu1 %v1670_v45 }
 0x252   :  { %1404 = vmatpush3.bf16.msra.mxu1 %v1671_v46 }
 0x253   :  { %1590 = vmatprep.subr.bf16.mxu1 %v1754_v11 }
 0x308   :  { %v684_v51 = vpop.f32.mrb[4].mxu1 }
 0x309   :  { %v691_v52 = vrot.slane %v684_v51, %v2048_v6  ;;  %v1505_v54 = vpop.f32.mrb[5].mxu1  ;;  %v699_v55 = vrot.slane %v684_v51, %v698_v49 }
 0x30b   :  { %v692_v56 = vmul.f32 %v691_v52, %v2009_v50  ;;  %v693_v57 = vmul.f32 %v691_v52, %v2011_v53  ;;  %v694_v58 = vmul.f32 %v691_v52, %v2019_v62  ;;  %v695_v60 = vmul.f32 %v691_v52, %v2024_v3 }
 0x30d   :  { %v702_v61 = vadd.f32 %v699_v55, %v694_v58  ;;  %v703_v63 = vadd.f32 %v699_v55, %v695_v60  ;;  %v700_v0 = vadd.f32 %v699_v55, %v692_v56  ;;  %v701_v1 = vadd.f32 %v699_v55, %v693_v57 }
 0x30f   :  { %v706_v2 = vmax.f32 %v702_v61, 0.0  ;;  %v707_v4 = vmax.f32 %v703_v63, 0.0  ;;  %v704_v5 = vmax.f32 %v700_v0, 0.0  ;;  %v705_v7 = vmax.f32 %v701_v1, 0.0 }
 0x311   :  { %v711_v8 = vrot.slane %v707_v4, 7  ;;  %v734_v12 = vpack.c.bf16 %v705_v7, %v704_v5  ;;  %v708_v13 = vrot.slane %v704_v5, 7  ;;  %v709_v15 = vrot.slane %v705_v7, 7 }
 0x312   :  { %v720_v16 = vrot.slane %v704_v5, 1  ;;  %v721_v50 = vrot.slane %v705_v7, 1  ;;  %v722_v18 = vrot.slane %v706_v2, 1  ;;  %v723_v62 = vrot.slane %v707_v4, 1 }
 0x313   :  { %962 = vmatprep.mubr.bf16.mxu1 %v734_v12  ;;  %v715_v53 = vsel %vm147_vm0, %v711_v8, %v708_v13  ;;  %v710_v3 = vrot.slane %v706_v2, 7  ;;  %v714_v22 = vsel %vm147_vm0, %v708_v13, %v709_v15  ;;  %v735_v36 = vpack.c.bf16 %v707_v4, %v706_v2 }
 0x314   :  { %v716_v19 = vmul.f32 %v1857_v35, %v715_v53  ;;  %v725_v21 = vsel %vm160_vm5, %v721_v50, %v722_v18  ;;  %v727_v25 = vsel %vm160_vm5, %v723_v62, %v720_v16  ;;  %v726_v28 = vsel %vm160_vm5, %v720_v16, %v721_v50 }
 0x315   :  { %v729_v24 = vmul.f32 %v1877_v40, %v725_v21  ;;  %v731_v31 = vmul.f32 %v1882_v41, %v727_v25  ;;  %v724_v35 = vsel %vm160_vm5, %v722_v18, %v723_v62  ;;  %v713_v43 = vsel %vm147_vm0, %v709_v15, %v710_v3 }
 0x316   :  { %v732_v27 = vpack.c.bf16 %v714_v22, %v716_v19  ;;  %v718_v40 = vmul.f32 %v1885_v42, %v713_v43  ;;  %v712_v41 = vsel %vm147_vm0, %v710_v3, %v711_v8 }
 0x317   :  { %v736_v33 = vpack.c.bf16 %v729_v24, %v726_v28  ;;  %v737_v44 = vpack.c.bf16 %v731_v31, %v724_v35 }
 0x318   :  { %963 = vmatmul.mubr.bf16.vlgmr.msra.gmra.mrb[8].mxu1 %v732_v27  ;;  %v733_v45 = vpack.c.bf16 %v712_v41, %v718_v40  ;;  %v1128_v41 = vld [vmem:[%s2139_s5] sm:$0x1]  ;;  %s1757_s5 = smov [#allocation7]  }
 0x319   :  { %1522 = vmatprep.mubr.bf16.mxu0 %v736_v33  ;;  %970 = vmatprep.mubr.bf16.mxu1 %v735_v36 }
 0x31a   :  { %1523 = vmatmul.mubr.bf16.vlgmr.msra.gmra.mrb[12].mxu0 %v737_v44  ;;  %1592 = vmatpush3.bf16.msra.mxu1 %v1931_v10 }
 0x31b   :  { %1593 = vmatprep.subr.bf16.mxu1 %v1754_v11  ;;  %1562 = vmatpush3.msra.mxu0 %v2033_v30 }
 0x31c   :  { %1563 = vmatprep.mubr.msk.f32.mxu0 %vm1755_vm6, %v1753_v34 }
 0x31e   :  { %1595 = vmatpush3.bf16.msra.mxu1 %v1942_v14 }
 0x31f   :  { %1596 = vmatprep.subr.bf16.mxu1 %v1754_v11 }
 0x320   :  { %971 = vmatmul.mubr.bf16.gmra.mrb[12].mxu1 %v733_v45 }
 0x321   :  { %1558 = vmatprep.mubr.msk.f32.mxu1 %vm1755_vm6, %v1753_v34 }
 0x322   :  { %1598 = vmatpush3.bf16.msra.mxu1 %v1952_v17 }
 0x323   :  { %1599 = vmatprep.subr.bf16.mxu1 %v1754_v11 }
 0x326   :  { %1601 = vmatpush3.bf16.msra.mxu1 %v1962_v20 }
 0x327   :  { %1602 = vmatprep.subr.bf16.mxu1 %v1754_v11 }
 0x32a   :  { %1604 = vmatpush3.bf16.msra.mxu1 %v1972_v23 }
 0x32b   :  { %1605 = vmatprep.subr.bf16.mxu1 %v1754_v11 }
 0x32e   :  { %1607 = vmatpush3.bf16.msra.mxu1 %v1982_v26 }
 0x32f   :  { %1608 = vmatprep.subr.bf16.mxu1 %v1754_v11 }
 0x332   :  { %1610 = vmatpush3.bf16.msra.mxu1 %v1992_v29 }
 0x333   :  { %1611 = vmatprep.subr.bf16.mxu1 %v1754_v11 }
 0x336   :  { %1613 = vmatpush3.bf16.msra.mxu1 %v2005_v32 }
 0x3eb   :  { %v1405_v34 = vpop.f32.mrb[8].mxu1 }
 0x3ec   :  { %v1406_v42 = vpop.f32.mrb[9].mxu1 }
 0x3ed   :  { %v1407_v10 = vadd.f32 %v1406_v42, %v1405_v34  ;;  %v1524_v14 = vpop.f32.mrb[12].mxu0  ;;  %v1408_v17 = vpop.f32.mrb[10].mxu1  ;;  %v1149_v42 = vld [vmem:[%s2140_s6] sm:$0x1]  ;;  %s1265_s6 = sshll.u32 %s1757_s5, 4  ;;  %s1266_s6 = int_to_ptr.vmem [resolvable:$true] %s1265_s6 }
 0x3ee   :  { %v1013_v20 = vpop.f32.mrb[13].mxu0  ;;  %v1409_v30 = vpop.f32.mrb[11].mxu1  ;;  %s1721_s1 = scalar_lea.vmem %s1266_s6, 512  ;;  %p1726_p3 = scmp.lt.s32.totalorder %s1266_s6, %s1266_s6 }
 0x3ef   :  { %v1014_v23 = vadd.f32 %v1407_v10, %v1013_v20  ;;  %v1410_v46 = vadd.f32 %v1409_v30, %v1408_v17  ;;  %v1525_v48 = vpop.f32.mrb[14].mxu0  ;;  %p1722_p2 = scmp.ne.s32.totalorder %s1266_s6, %s1721_s1  ;;  %p1727_p4 = scmp.lt.s32.totalorder %s1721_s1, %s1721_s1 }
 0x3f0   :  { %v1016_v51 = vpop.f32.mrb[15].mxu0 }
 0x3f1   :  { %v1017_v26 = vadd.f32 %v1410_v46, %v1016_v51  ;;  %v1037_v57 = vmul.f32 %v1014_v23, %v1014_v23  ;;  %p1728_p5 = por %p1727_p4, %p1726_p3 }
 0x3f3   :  { %v1411_v52 = vpop.f32.mrb[12].mxu1  ;;  %v1038_v55 = vmul.f32 %v1017_v26, %v1017_v26  ;;  %v1028_v32 = vadd.f32 %v1017_v26, %v1014_v23  ;;  %p1729_p6 = pnand %p1728_p5, %p1722_p2 }
 0x3f4   :  { %v1412_v54 = vpop.f32.mrb[13].mxu1 }
 0x3f5   :  { %v1413_v29 = vadd.f32 %v1412_v54, %v1411_v52  ;;  %v1414_v56 = vpop.f32.mrb[14].mxu1  ;;  %v1041_v61 = vadd.f32 %v1038_v55, %v1037_v57 }
 0x3f6   :  { %v1415_v11 = vpop.f32.mrb[15].mxu1 }
 0x3f7   :  { %v1022_v58 = vadd.f32 %v1524_v14, %v1413_v29  ;;  %v1416_v60 = vadd.f32 %v1415_v11, %v1414_v56 }
 0x3f9   :  { %v1029_v63 = vadd.f32 %v1028_v32, %v1022_v58  ;;  %v1039_v0 = vmul.f32 %v1022_v58, %v1022_v58  ;;  %v1025_v1 = vadd.f32 %v1525_v48, %v1416_v60 }
 0x3fb   :  { %v1042_v2 = vadd.f32 %v1041_v61, %v1039_v0  ;;  %v1030_v4 = vadd.f32 %v1029_v63, %v1025_v1  ;;  %v1040_v5 = vmul.f32 %v1025_v1, %v1025_v1 }
 0x3fd   :  { %v1031_v7 = vrot.slane %v1030_v4, 4  ;;  %v1043_v8 = vadd.f32 %v1042_v2, %v1040_v5 }
 0x3ff   :  { %v1032_v12 = vadd.f32 %v1031_v7, %v1030_v4  ;;  %v1044_v13 = vrot.slane %v1043_v8, 4 }
 0x401   :  { %v1033_v15 = vrot.slane %v1032_v12, 2  ;;  %v1045_v16 = vadd.f32 %v1044_v13, %v1043_v8 }
 0x403   :  { %v1034_v50 = vadd.f32 %v1033_v15, %v1032_v12  ;;  %v1046_v18 = vrot.slane %v1045_v16, 2 }
 0x405   :  { %v1035_v53 = vrot.slane %v1034_v50, 1  ;;  %v1047_v62 = vadd.f32 %v1046_v18, %v1045_v16 }
 0x407   :  { %v1048_v3 = vrot.slane %v1047_v62, 1  ;;  %v1036_v19 = vadd.f32 %v1035_v53, %v1034_v50 }
 0x409   :  { %v1049_v21 = vadd.f32 %v1048_v3, %v1047_v62 }
 0x40b   :  { %v1050_v22 = vsel %vm487_vm7, %v1036_v19, %v1049_v21 }
 0x40c   :  { %1559 = vmatmul.mubr.f32.vlgmr.msra.gmra.mrb[6].mxu1 %v1050_v22 }
 0x4df   :  { %v1117_v24 = vpop.f32.mrb[6].mxu1 }
 0x4e0   :  { %v1121_v25 = vmul.f32 0.001953125, %v1117_v24  ;;  %v1560_v27 = vpop.f32.mrb[7].mxu1 }
 0x4e2   :  { %v1122_v28 = vmul.f32 %v1121_v25, %v1121_v25 }
 0x4e4   :  { %v1124_v31 = vrot.slane %v1122_v28, 7 }
 0x4e6   :  { %v1126_v33 = vsub.f32 %v1121_v25, %v1124_v31 }
 0x4e8   :  { %v1127_v36 = vmax.f32 %v1126_v33, 0.0 }
 0x4ea   :  { %v1129_v35 = vadd.f32 1e-05, %v1127_v36 }
 0x4ec   :  { %1675 = vrsqrt.f32 %v1129_v35 }
 0x4f6   :  { %v1676_v43 = vpop.eup %1675 }
 0x4f7   :  { %v1138_v44 = vrot.slane %v1676_v43, %v2037_v59 }
 0x4f9   :  { %v1139_v40 = vcombine.high %v1138_v44, %v1138_v44 }
 0x4fb   :  { %v1146_v45 = vrot.slane %v1139_v40, %v2037_v59 }
 0x4fd   :  { %v1148_v34 = vmul.f32 %v1146_v45, %v1128_v41 }
 0x4ff   :  { %v1150_v10 = vmul.f32 %v1148_v34, %v1121_v25 }
 0x501   :  { %v1151_v14 = vsub.f32 %v1149_v42, %v1150_v10 }
 0x503   :  { %v1156_v17 = vrot.slane %v1151_v14, %v2048_v6 }
 0x505   :  { %v1158_v20 = vsel %vm487_vm7, %v1148_v34, %v1156_v17 }
 0x506   :  { %1564 = vmatmul.mubr.msk.f32.vlgmr.msra.gmra.mrb[10].mxu0 %vm614_vm8, %v1158_v20 }
 0x5d9   :  { %v1228_v30 = vpop.f32.mrb[10].mxu0 }
 0x5da   :  { %v1235_v46 = vrot.slane %v1228_v30, %v2048_v6  ;;  %v1565_v48 = vpop.f32.mrb[11].mxu0  ;;  %v1243_v59 = vrot.slane %v1228_v30, %v698_v49 }
 0x5dc   :  { %v1236_v51 = vmul.f32 %v1235_v46, %v1014_v23  ;;  %v1237_v52 = vmul.f32 %v1235_v46, %v1017_v26  ;;  %v1238_v54 = vmul.f32 %v1235_v46, %v1022_v58  ;;  %v1239_v55 = vmul.f32 %v1235_v46, %v1025_v1 }
 0x5de   :  { %v1244_v29 = vadd.f32 %v1243_v59, %v1236_v51  ;;  %v1245_v56 = vadd.f32 %v1243_v59, %v1237_v52  ;;  %v1246_v11 = vadd.f32 %v1243_v59, %v1238_v54  ;;  %v1247_v57 = vadd.f32 %v1243_v59, %v1239_v55 }
 0x5e0   :  { %v1248_v32 = vadd.f32 %v1244_v29, %v1862_v37  ;;  %v1249_v60 = vadd.f32 %v1245_v56, %v1867_v38  ;;  %v1250_v6 = vadd.f32 %v1246_v11, %v1895_v47  ;;  %v1251_v61 = vadd.f32 %v1247_v57, %v1872_v39 }
 0x5e2   :  { %v1252_v9 = vmax.f32 %v1248_v32, 0.0  ;;  %v1253_v49 = vmax.f32 %v1249_v60, 0.0  ;;  %v1254_v23 = vmax.f32 %v1250_v6, 0.0  ;;  %v1255_v26 = vmax.f32 %v1251_v61, 0.0 }
 0x5e4   :  { %1256 = vst [vmem:[#allocation7] sm:$0xff] %v1252_v9  ;;  %1257 = vst [vmem:[#allocation7 + $0x8] sm:$0xff] %v1253_v49 }
 0x5e5   :  { %1258 = vst [vmem:[#allocation7 + $0x10] sm:$0xff] %v1254_v23  ;;  %1259 = vst [vmem:[#allocation7 + $0x18] sm:$0xff] %v1255_v26 }
 0x5e6   :  { %1732 = shalt.err (!%p1729_p6)
}
 0x5e7   :  { %s1733_s13 = scalar_lea.hbm %s2143_s9, 512 }
 0x5e8   :  { %p1734_p7 = scmp.ne.s32.totalorder %s2143_s9, %s1733_s13  ;;  %p1737_p8 = scmp.lt.u32.totalorder %s1733_s13, %s2143_s9 }
 0x5ea   :  { %p1739_p9 = pnand %p1737_p8, %p1734_p7 }
 0x5ec   :  { %1742 = shalt.err (!%p1739_p9)
}
 0x5ed   :  { %s1758_s18 = smov 128   ;;  %s1759_s19 = smov 8  }
 0x5ee   :  { %1271 = dma.vmem_to_hbm [thread:$0]  %s1266_s6, 512, %s2143_s9, [#allocation4], %s1758_s18, %s1758_s18, %s1759_s19  }
 0x5ef   :  { %1747 = dma.done.wait [#allocation4], 512  }
 0x5f0   :  { %1748 = vsyncadd [#allocation4], 4294966784 }
 0x5f1   :  { %1275 = vsyncpa [#allocation3], 1 }
 0x5f2   :  { %1276 = vsyncpa [#allocation6], 1 }
 0x5f3   :  { %1277 = vsyncpa [#allocation4], 1 }

</bundles_post_ra>
